<compile_context>
chip_gen: v7x
topology: tpu7x:2x2x1
jax: 0.10.0
libtpu: 0.0.40
codegen_flags: <defaults>
</compile_context>

<pallas_src>
import functools

import jax
import jax.numpy as jnp
from jax.experimental import pallas as pl
from jax.experimental.pallas import tpu as pltpu


# ---------------------------------------------------------------------------
# chip-aware resource discovery
# ---------------------------------------------------------------------------
def _chip_info():
    """Returns (vmem_bytes, num_tensorcores).

    Conservative fallbacks if the query is unavailable: 64 MiB VMEM (safe on
    every generation, including v7x) and 1 TensorCore."""
    vmem_bytes = 64 << 20
    num_cores = 1
    try:
        info = pltpu.get_tpu_info()
        try:
            v = int(getattr(info, "vmem_capacity_bytes"))
            if v > 0:
                vmem_bytes = v
        except Exception:
            pass
        for attr in ("num_cores", "num_tensorcores", "tensorcores_per_chip",
                     "core_count"):
            try:
                nc = int(getattr(info, attr))
                if nc > 0:
                    num_cores = nc
                    break
            except Exception:
                continue
    except Exception:
        pass
    return int(vmem_bytes), int(num_cores)


def _pick_batch_tile(n: int, max_fit: int, num_cores: int) -> int:
    """Batch-tile size.

    Single-core chips (v5e/v6e): just the largest tile that fits VMEM (fewer
    grid steps, bigger DMAs, bigger matmul M).
    Multi-core chips (v7x): smallest step count that is a multiple of the
    core count while the per-step block still fits VMEM (balanced megacore)."""
    max_fit = max(1, min(max_fit, n))
    if num_cores <= 1 or n <= 1:
        return max_fit
    steps = num_cores
    while steps < n and pl.cdiv(n, steps) > max_fit:
        steps += num_cores
    return max(1, min(max_fit, pl.cdiv(n, steps)))


# ---------------------------------------------------------------------------
# kernels
# ---------------------------------------------------------------------------
def _se_fused_kernel(x_ref, w1_ref, b1_ref, w2_ref, b2_ref, o_ref):
    """Single fused pass over a (TB, C, HW) block: pool + MLP + rescale."""
    x = x_ref[...]                                            # native dtype
    # squeeze: upcast only inside the reduction (no long-lived f32 tile)
    pooled = jnp.mean(x.astype(jnp.float32), axis=-1)         # (TB, C) f32
    # excitation MLP in f32
    z = jnp.dot(pooled, w1_ref[...],
                preferred_element_type=jnp.float32) + b1_ref[...]
    z = jax.nn.relu(z)
    g = jnp.dot(z, w2_ref[...],
                preferred_element_type=jnp.float32) + b2_ref[...]
    g = jax.nn.sigmoid(g)                                     # (TB, C) f32
    # channel-wise rescale in the input's native dtype
    o_ref[...] = x * g.astype(x.dtype)[:, :, None]


def _se_pool_kernel(x_ref, s_ref, acc_ref, *, hw: int, thw: int):
    """HW-tiled global average pool.  grid = (N, n_hw_tiles), k-axis is the
    reduction ('arbitrary'); output block index is constant over k."""
    k = pl.program_id(1)

    @pl.when(k == 0)
    def _():
        acc_ref[...] = jnp.zeros_like(acc_ref)

    xb = x_ref[...].astype(jnp.float32)                       # (1, C, THW)
    # mask the ragged spatial tail of the last tile
    col = k * thw + jax.lax.broadcasted_iota(jnp.int32, xb.shape, 2)
    xb = jnp.where(col < hw, xb, 0.0)
    acc_ref[...] += jnp.sum(xb, axis=-1)[:, None, :]          # (1, 1, C)

    @pl.when(k == pl.num_programs(1) - 1)
    def _():
        s_ref[...] = acc_ref[...] * (1.0 / hw)


def _se_scale_kernel(s_ref, w1_ref, b1_ref, w2_ref, b2_ref, x_ref, o_ref):
    """HW-tiled rescale pass; recomputes the (tiny) excitation MLP per tile."""
    pooled = s_ref[...][:, 0, :]                              # (1, C) f32
    z = jax.nn.relu(jnp.dot(pooled, w1_ref[...],
                            preferred_element_type=jnp.float32) + b1_ref[...])
    g = jax.nn.sigmoid(jnp.dot(z, w2_ref[...],
                               preferred_element_type=jnp.float32) + b2_ref[...])
    x = x_ref[...]                                            # (1, C, THW)
    o_ref[...] = x * g.astype(x.dtype)[:, :, None]


# ---------------------------------------------------------------------------
# module wrapper
# ---------------------------------------------------------------------------
class SEAttentionPallas:
    """Mirrors AbstractAttentionModule's __init__ channel-selection logic and
    implements the canonical SE forward pass with Pallas TPU kernels."""

    def __init__(self, c: int, c_substitute: int = None,
                 use_c_substitute: bool = False, c_mul: float = 0.25):
        # abstract-class logic: pick channel count used for the inner dim
        self.c = c_substitute if isinstance(c_substitute, int) and use_c_substitute else c
        self.c_in = c                                  # actual tensor channels
        self.c_inner = max(1, int(self.c * c_mul))

        # deterministic parameter init (synthetic; no checkpoint load)
        k1, k2 = jax.random.split(jax.random.PRNGKey(42))
        self.w1 = (jax.random.normal(k1, (self.c_in, self.c_inner), jnp.float32)
                   * (1.0 / jnp.sqrt(self.c_in)))
        self.b1 = jnp.zeros((1, self.c_inner), jnp.float32)
        self.w2 = (jax.random.normal(k2, (self.c_inner, self.c_in), jnp.float32)
                   * (1.0 / jnp.sqrt(self.c_inner)))
        self.b2 = jnp.zeros((1, self.c_in), jnp.float32)

    # -- public forward ----------------------------------------------------
    def __call__(self, x_nchw: jnp.ndarray, *, force_two_pass: bool = False,
                 max_batch_tile: int = None,
                 max_spatial_tile: int = None) -> jnp.ndarray:
        n, c, h, w = x_nchw.shape
        assert c == self.c_in
        hw = h * w
        itemsize = jnp.dtype(x_nchw.dtype).itemsize

        vmem_bytes, num_cores = _chip_info()
        budget = (vmem_bytes * 3) // 4                # 48 MiB on v7x, 96 on v5e/v6e

        # zero-copy layout: NCHW -> (N, C, HW); HW sits on the lane axis.
        x = x_nchw.reshape(n, c, hw)

        weight_bytes = int((self.w1.size + self.b1.size
                            + self.w2.size + self.b2.size) * 4)
        # per-element VMEM accounting: double-buffered in + out, one native-
        # dtype product temp, one transient f32 tile from the pooling upcast.
        factor = 4 * itemsize + itemsize + 4
        per_elem = c * hw * factor

        avail = budget - 2 * weight_bytes - (2 << 20)
        max_fit = max(1, avail // per_elem)
        if max_batch_tile is not None:
            max_fit = max(1, min(max_fit, int(max_batch_tile)))
        tb = _pick_batch_tile(n, max_fit, num_cores)
        steps = pl.cdiv(n, tb)

        fits_one = per_elem + 2 * weight_bytes + (2 << 20) <= budget
        two_pass = force_two_pass or (not fits_one) or (
            num_cores > 1 and steps < num_cores and hw >= 256)
        if two_pass and hw < 128:
            # TODO(synk): a (C, HW<128) slab too large for VMEM cannot be
            # HW-split on the lane axis; fall back to the fused path.
            two_pass = False

        if two_pass:
            out = self._two_pass(x, n, c, hw, itemsize, weight_bytes, budget,
                                 vmem_bytes, num_cores, max_spatial_tile)
        else:
            out = self._fused(x, n, c, hw, tb, steps, weight_bytes, per_elem,
                              vmem_bytes)
        return out.reshape(n, c, h, w)

    # -- fused single-pass path ---------------------------------------------
    def _fused(self, x, n, c, hw, tb, steps, weight_bytes, per_elem, vmem_bytes):
        needed = tb * per_elem + 2 * weight_bytes + (4 << 20)
        vmem_limit = int(min(max(needed, 32 << 20), vmem_bytes - (8 << 20)))
        return pl.pallas_call(
            _se_fused_kernel,
            out_shape=jax.ShapeDtypeStruct(x.shape, x.dtype),
            grid_spec=pltpu.PrefetchScalarGridSpec(
                num_scalar_prefetch=0,
                grid=(steps,),
                in_specs=[
                    pl.BlockSpec((tb, c, hw), lambda i: (i, 0, 0)),
                    pl.BlockSpec((c, self.c_inner), lambda i: (0, 0)),
                    pl.BlockSpec((1, self.c_inner), lambda i: (0, 0)),
                    pl.BlockSpec((self.c_inner, c), lambda i: (0, 0)),
                    pl.BlockSpec((1, c), lambda i: (0, 0)),
                ],
                out_specs=pl.BlockSpec((tb, c, hw), lambda i: (i, 0, 0)),
            ),
            compiler_params=pltpu.CompilerParams(
                dimension_semantics=("parallel",),
                vmem_limit_bytes=vmem_limit),
        )(x, self.w1, self.b1, self.w2, self.b2)

    # -- two-pass (HW-tiled) path --------------------------------------------
    def _two_pass(self, x, n, c, hw, itemsize, weight_bytes, budget,
                  vmem_bytes, num_cores, max_spatial_tile):
        factor = 4 * itemsize + itemsize + 4
        hw_r = pl.cdiv(hw, 128) * 128                       # lane-rounded HW
        max_thw = max(128, (budget // (c * factor)) // 128 * 128)
        want = max(1, num_cores)                            # >=1 tile per core
        split = max(128, ((pl.cdiv(hw_r, want) + 127) // 128) * 128)
        thw = max(128, min(max_thw, split))
        if max_spatial_tile is not None:
            thw = max(128, min(thw, (int(max_spatial_tile) // 128) * 128))
        if thw >= hw:
            thw = hw                                        # full dim is always legal
        nhw = pl.cdiv(hw, thw)

        vlimit = int(min(max(c * thw * factor + 2 * weight_bytes + (4 << 20),
                             32 << 20),
                         vmem_bytes - (8 << 20)))

        pooled = pl.pallas_call(
            functools.partial(_se_pool_kernel, hw=hw, thw=thw),
            out_shape=jax.ShapeDtypeStruct((n, 1, c), jnp.float32),
            grid_spec=pltpu.PrefetchScalarGridSpec(
                num_scalar_prefetch=0,
                grid=(n, nhw),
                in_specs=[pl.BlockSpec((1, c, thw), lambda b, k: (b, 0, k))],
                out_specs=pl.BlockSpec((1, 1, c), lambda b, k: (b, 0, 0)),
                scratch_shapes=[pltpu.VMEM((1, 1, c), jnp.float32)]),
            compiler_params=pltpu.CompilerParams(
                dimension_semantics=("parallel", "arbitrary"),
                vmem_limit_bytes=vlimit),
        )(x)

        return pl.pallas_call(
            _se_scale_kernel,
            out_shape=jax.ShapeDtypeStruct(x.shape, x.dtype),
            grid_spec=pltpu.PrefetchScalarGridSpec(
                num_scalar_prefetch=0,
                grid=(n, nhw),
                in_specs=[
                    pl.BlockSpec((1, 1, c), lambda b, k: (b, 0, 0)),
                    pl.BlockSpec((c, self.c_inner), lambda b, k: (0, 0)),
                    pl.BlockSpec((1, self.c_inner), lambda b, k: (0, 0)),
                    pl.BlockSpec((self.c_inner, c), lambda b, k: (0, 0)),
                    pl.BlockSpec((1, c), lambda b, k: (0, 0)),
                    pl.BlockSpec((1, c, thw), lambda b, k: (b, 0, k)),
                ],
                out_specs=pl.BlockSpec((1, c, thw), lambda b, k: (b, 0, k)),
            ),
            compiler_params=pltpu.CompilerParams(
                dimension_semantics=("parallel", "parallel"),
                vmem_limit_bytes=vlimit),
        )(pooled, self.w1, self.b1, self.w2, self.b2, x)

    # -- pure-JAX reference ---------------------------------------------------
    def reference(self, x_nchw: jnp.ndarray) -> jnp.ndarray:
        s = jnp.mean(x_nchw.astype(jnp.float32), axis=(2, 3))        # (N, C)
        z = jax.nn.relu(s @ self.w1 + self.b1)
        g = jax.nn.sigmoid(z @ self.w2 + self.b2).astype(x_nchw.dtype)
        return x_nchw * g[:, :, None, None]


if __name__ == "__main__":
    # TODO(synk): abstract base forward() raises NotImplementedError; the
    # canonical SE subclass semantics are implemented here instead.

    # 1) fused path, HW a multiple of 128 (lane-dense stores)
    x = jax.random.normal(jax.random.PRNGKey(0), (2, 4, 16, 16), jnp.float32)
    mod = SEAttentionPallas(c=4, c_substitute=None, use_c_substitute=False)
    y = jax.block_until_ready(mod(x))
    assert y.shape == x.shape
    assert jnp.allclose(y, mod.reference(x), atol=1e-5, rtol=1e-5)

    # 2) fused path, HW < 128 (kept NCHW; only tail-masked stores, no transpose)
    x2 = jax.random.normal(jax.random.PRNGKey(1), (2, 4, 7, 7), jnp.float32)
    y2 = jax.block_until_ready(mod(x2))
    assert jnp.allclose(y2, mod.reference(x2), atol=1e-5, rtol=1e-5)

    # 3) fused path with a non-divisible batch (partial last batch block)
    x3 = jax.random.normal(jax.random.PRNGKey(2), (3, 4, 16, 16), jnp.float32)
    y3 = jax.block_until_ready(mod(x3, max_batch_tile=2))
    assert jnp.allclose(y3, mod.reference(x3), atol=1e-5, rtol=1e-5)

    # 4) two-pass HW-tiled path (batch-1 style), incl. a ragged spatial tail
    mod8 = SEAttentionPallas(c=8)
    x4 = jax.random.normal(jax.random.PRNGKey(3), (1, 8, 18, 18), jnp.float32)
    y4 = jax.block_until_ready(mod8(x4, force_two_pass=True, max_spatial_tile=128))
    assert jnp.allclose(y4, mod8.reference(x4), atol=1e-5, rtol=1e-5)

    print("KERNEL_OK")
</pallas_src>

<mosaic_0001>
module attributes {stable_mosaic.version = 11 : i64} {
  func.func @_se_fused_kernel(%arg0: i32, %arg1: memref<2x4x256xf32, #tpu.memory_space<vmem>>, %arg2: memref<4x1xf32, #tpu.memory_space<vmem>>, %arg3: memref<1x1xf32, #tpu.memory_space<vmem>>, %arg4: memref<1x4xf32, #tpu.memory_space<vmem>>, %arg5: memref<1x4xf32, #tpu.memory_space<vmem>>, %arg6: memref<2x4x256xf32, #tpu.memory_space<vmem>>) attributes {dimension_semantics = [#tpu.dimension_semantics<parallel>], iteration_bounds = array<i64: 1>, scalar_prefetch = 0 : i64, scratch_operands = 0 : i64, tpu.core_type = #tpu.core_type<tc>, window_params = [{transform_indices = @transform_0, window_bounds = array<i64: 2, 4, 256>}, {pipeline_mode = #tpu.pipeline_mode<synchronous>, transform_indices = @transform_1, window_bounds = array<i64: 4, 1>}, {pipeline_mode = #tpu.pipeline_mode<synchronous>, transform_indices = @transform_2, window_bounds = array<i64: 1, 1>}, {pipeline_mode = #tpu.pipeline_mode<synchronous>, transform_indices = @transform_3, window_bounds = array<i64: 1, 4>}, {pipeline_mode = #tpu.pipeline_mode<synchronous>, transform_indices = @transform_4, window_bounds = array<i64: 1, 4>}, {transform_indices = @transform_5, window_bounds = array<i64: 2, 4, 256>}]} {
    %c0 = arith.constant 0 : index
    %c0_0 = arith.constant 0 : index
    %c0_1 = arith.constant 0 : index
    %0 = vector.load %arg1[%c0, %c0_0, %c0_1] : memref<2x4x256xf32, #tpu.memory_space<vmem>>, vector<2x4x256xf32>
    %cst = arith.constant dense<0.000000e+00> : vector<2x4xf32>
    %1 = vector.multi_reduction <add>, %0, %cst [2] : vector<2x4x256xf32> to vector<2x4xf32>
    %cst_2 = arith.constant 2.560000e+02 : f32
    %2 = vector.broadcast %cst_2 : f32 to vector<2x4xf32>
    %3 = arith.divf %1, %2 : vector<2x4xf32>
    %c0_3 = arith.constant 0 : index
    %c0_4 = arith.constant 0 : index
    %4 = vector.load %arg2[%c0_3, %c0_4] : memref<4x1xf32, #tpu.memory_space<vmem>>, vector<4x1xf32>
    %cst_5 = arith.constant dense<0.000000e+00> : vector<2x1xf32>
    %5 = tpu.matmul %3, %4, %cst_5 {dimension_numbers = #tpu.dot_dimension_numbers<[1], [0], [0], [1], [0, 0, 1, 1], [], []>} : vector<2x4xf32>, vector<4x1xf32>, vector<2x1xf32> -> vector<2x1xf32>
    %c0_6 = arith.constant 0 : index
    %c0_7 = arith.constant 0 : index
    %6 = vector.load %arg3[%c0_6, %c0_7] : memref<1x1xf32, #tpu.memory_space<vmem>>, vector<1x1xf32>
    %7 = vector.broadcast %6 : vector<1x1xf32> to vector<2x1xf32>
    %8 = arith.addf %5, %7 : vector<2x1xf32>
    %cst_8 = arith.constant 0.000000e+00 : f32
    %9 = vector.broadcast %cst_8 : f32 to vector<2x1xf32>
    %10 = arith.maximumf %8, %9 : vector<2x1xf32>
    %c0_9 = arith.constant 0 : index
    %c0_10 = arith.constant 0 : index
    %11 = vector.load %arg4[%c0_9, %c0_10] : memref<1x4xf32, #tpu.memory_space<vmem>>, vector<1x4xf32>
    %cst_11 = arith.constant dense<0.000000e+00> : vector<2x4xf32>
    %12 = tpu.matmul %10, %11, %cst_11 {dimension_numbers = #tpu.dot_dimension_numbers<[1], [0], [0], [1], [0, 0, 1, 1], [], []>} : vector<2x1xf32>, vector<1x4xf32>, vector<2x4xf32> -> vector<2x4xf32>
    %c0_12 = arith.constant 0 : index
    %c0_13 = arith.constant 0 : index
    %13 = vector.load %arg5[%c0_12, %c0_13] : memref<1x4xf32, #tpu.memory_space<vmem>>, vector<1x4xf32>
    %14 = vector.broadcast %13 : vector<1x4xf32> to vector<2x4xf32>
    %15 = arith.addf %12, %14 : vector<2x4xf32>
    %16 = arith.negf %15 : vector<2x4xf32>
    %17 = math.exp %16 : vector<2x4xf32>
    %cst_14 = arith.constant 1.000000e+00 : f32
    %18 = vector.broadcast %cst_14 : f32 to vector<2x4xf32>
    %19 = arith.addf %18, %17 : vector<2x4xf32>
    %20 = arith.divf %18, %19 : vector<2x4xf32>
    %21 = vector.shape_cast %20 : vector<2x4xf32> to vector<2x4x1xf32>
    %22 = vector.broadcast %21 : vector<2x4x1xf32> to vector<2x4x256xf32>
    %23 = arith.mulf %0, %22 : vector<2x4x256xf32>
    %c0_15 = arith.constant 0 : index
    %c0_16 = arith.constant 0 : index
    %c0_17 = arith.constant 0 : index
    %24 = vector.load %arg6[%c0_15, %c0_16, %c0_17] : memref<2x4x256xf32, #tpu.memory_space<vmem>>, vector<2x4x256xf32>
    tpu.vector_store %arg6[%c0_15, %c0_16, %c0_17], %23 {strides = array<i32>} : memref<2x4x256xf32, #tpu.memory_space<vmem>>, vector<2x4x256xf32>,
    return
  }
  func.func @transform_0(%arg0: i32) -> (i32, i32, i32) {
    %c0_i32 = arith.constant 0 : i32
    %c0_i32_0 = arith.constant 0 : i32
    %c0_i32_1 = arith.constant 0 : i32
    return %arg0, %c0_i32, %c0_i32_0 : i32, i32, i32
  }
  func.func @transform_1(%arg0: i32) -> (i32, i32) {
    %c0_i32 = arith.constant 0 : i32
    %c0_i32_0 = arith.constant 0 : i32
    %c0_i32_1 = arith.constant 0 : i32
    return %c0_i32, %c0_i32_0 : i32, i32
  }
  func.func @transform_2(%arg0: i32) -> (i32, i32) {
    %c0_i32 = arith.constant 0 : i32
    %c0_i32_0 = arith.constant 0 : i32
    %c0_i32_1 = arith.constant 0 : i32
    return %c0_i32, %c0_i32_0 : i32, i32
  }
  func.func @transform_3(%arg0: i32) -> (i32, i32) {
    %c0_i32 = arith.constant 0 : i32
    %c0_i32_0 = arith.constant 0 : i32
    %c0_i32_1 = arith.constant 0 : i32
    return %c0_i32, %c0_i32_0 : i32, i32
  }
  func.func @transform_4(%arg0: i32) -> (i32, i32) {
    %c0_i32 = arith.constant 0 : i32
    %c0_i32_0 = arith.constant 0 : i32
    %c0_i32_1 = arith.constant 0 : i32
    return %c0_i32, %c0_i32_0 : i32, i32
  }
  func.func @transform_5(%arg0: i32) -> (i32, i32, i32) {
    %c0_i32 = arith.constant 0 : i32
    %c0_i32_0 = arith.constant 0 : i32
    %c0_i32_1 = arith.constant 0 : i32
    return %arg0, %c0_i32, %c0_i32_0 : i32, i32, i32
  }
}

</mosaic_0001>

<bundles_post_ra>
// kernel: tpu_custom_call.1
= control target key start
LH: loop header
LB: loop body
LE: loop exit
PB: predicated region body
PF: predicated region fallthrough
CT: control target
= control target key end

     0   :  { %s481_s0 = inlined_call_operand.hbm [shape: f32[2,4,256], index: 0, kind: input, shape index: {}]   ;;  %s482_s1 = inlined_call_operand.vmem [shape: f32[4,1], index: 1, kind: input, shape index: {}]   ;;  %s483_s2 = inlined_call_operand.<no memory space> [shape: f32[1,1], index: 2, kind: input, shape index: {}]   ;;  %s484_s3 = inlined_call_operand.vmem [shape: f32[1,4], index: 3, kind: input, shape index: {}]   ;;  %s485_s4 = inlined_call_operand.vmem [shape: f32[1,4], index: 4, kind: input, shape index: {}]   ;;  %s486_s5 = inlined_call_operand.hbm [shape: f32[2,4,256], index: 5, kind: output, shape index: {}]  }
   0x1   :  { %v10_v0 = vstv %s483_s2 }
   0x2   :  { %11 = vst [vmem:[#allocation2] sm:$0x1] %v10_v0 }
   0x3   :  { %12 = vsyncpa [#allocation4], 0 }
   0x4   :  { %13 = vsyncpa [#allocation5], 0  ;;  %s385_s20 = smov [#allocation3]   ;;  %s337_s24 = scalar_lea.hbm %s481_s0, 256 }
   0x5   :  { %s19_s21 = sshll.u32 %s385_s20, 4  ;;  %p338_p0 = scmp.ne.s32.totalorder %s481_s0, %s337_s24  ;;  %s20_s21 = int_to_ptr.vmem [resolvable:$true] %s19_s21 }
   0x6   :  { %p341_p1 = scmp.lt.u32.totalorder %s337_s24, %s481_s0 }
   0x8   :  { %p343_p2 = pnand %p341_p1, %p338_p0 }
   0xa   :  { %346 = shalt.err (!%p343_p2)
}
   0xb   :  { %s347_s2 = scalar_lea.vmem %s20_s21, 256  ;;  %p352_p4 = scmp.lt.s32.totalorder %s20_s21, %s20_s21 }
   0xc   :  { %p348_p3 = scmp.ne.s32.totalorder %s20_s21, %s347_s2  ;;  %p353_p5 = scmp.lt.s32.totalorder %s347_s2, %s347_s2 }
   0xe   :  { %p354_p6 = por %p353_p5, %p352_p4 }
  0x10   :  { %p355_p7 = pnand %p354_p6, %p348_p3 }
  0x12   :  { %358 = shalt.err (!%p355_p7)
}
  0x13   :  { %s386_s29 = smov 128   ;;  %s387_s30 = smov 8  }
  0x14   :  { %25 = dma.hbm_to_vmem [thread:$0]  %s481_s0, 256, %s20_s21, [#allocation4], %s386_s29, %s386_s29, %s387_s30  }
  0x15   :  { %381 = dma.done.wait [#allocation4], 256  }
  0x16   :  { %382 = vsyncadd [#allocation4], 4294967040  ;;  %vm45_vm0 = vcmask 1043456   ;;  %v440_v1 = vld [vmem:[#allocation3] sm:$0xff]  ;;  %v442_v2 = vld [vmem:[#allocation3 + $0x8] sm:$0xff]  ;;  %v388_v12 = vmov 0.0   ;;  %v69_v13 = vlaneseq }
  0x17   :  { %v41_v3 = vcombine.high %v440_v1, %v440_v1  ;;  %v46_v4 = vsel %vm45_vm0, %v440_v1, 0.0  ;;  %v42_v5 = vcombine.high %v442_v2, %v442_v2  ;;  %v51_v7 = vsel %vm45_vm0, %v442_v2, 0.0  ;;  %v59_v11 = vld [vmem:[%s482_s1] sm:$0xf]  ;;  %314 = vmatprep.subr.mxu0 %v388_v12  ;;  %319 = vmatprep.subr.mxu1 %v388_v12 }
  0x18   :  { %vm389_vm1 = vmmov 0   ;;  %315 = vmatpush3.msk.msra.mxu0 %vm45_vm0, %v59_v11  ;;  %v70_v14 = vand.u32 127, %v69_v13  ;;  %v72_v15 = vshrl.u32 %v69_v13, 7  ;;  %vm79_vm2 = vcmask 1041409   ;;  %v158_v24 = vld [vmem:[%s484_s3] sm:$0x1] }
  0x19   :  { %v47_v6 = vsel %vm45_vm0, %v41_v3, 0.0  ;;  %v52_v8 = vsel %vm45_vm0, %v42_v5, 0.0  ;;  %316 = vmatprep.mubr.msk.f32.mxu0 %vm389_vm1, %v388_v12  ;;  %321 = vmatprep.mubr.msk.f32.mxu1 %vm389_vm1, %v388_v12  ;;  %vm81_vm3 = vcmask 31744   ;;  %vm170_vm4 = vcmask 1040384   ;;  %v303_v25 = vld [vmem:[#allocation2] ss:$0 sm:$0xff] }
  0x1a   :  { %v48_v9 = vadd.f32 %v47_v6, %v46_v4  ;;  %v53_v10 = vadd.f32 %v52_v8, %v51_v7  ;;  %v73_v17 = vsub.s32 %v70_v14, %v72_v15  ;;  %320 = vmatpush3.msk.msra.mxu1 %vm170_vm4, %v158_v24  ;;  %vm166_vm5 = vcmask 7168   ;;  %v306_v30 = vld [vmem:[%s485_s4] ss:$0 sm:$0xff]  ;;  %s391_s3 = smov [#allocation6]  }
  0x1b   :  { %v252_v37 = vsub.s32 0, %v72_v15  ;;  %v259_v40 = vsub.s32 1, %v72_v15  ;;  %v390_v42 = vmov 839922192   ;;  %s291_s4 = sshll.u32 %s391_s3, 4  ;;  %s292_s4 = int_to_ptr.vmem [resolvable:$true] %s291_s4 }
  0x1c   :  { %49 = vadd.xlane.f32.xlu0 %v48_v9  ;;  %v267_v43 = vunpack.c.l.s4 %v390_v42  ;;  %s359_s12 = scalar_lea.vmem %s292_s4, 256  ;;  %p364_p9 = scmp.lt.s32.totalorder %s292_s4, %s292_s4 }
  0x1d   :  { %p360_p8 = scmp.ne.s32.totalorder %s292_s4, %s359_s12  ;;  %p365_p10 = scmp.lt.s32.totalorder %s359_s12, %s359_s12 }
  0x1e   :  { %v268_v44 = vunpack.c.0.s8 %v267_v43 }
  0x1f   :  { %p366_p11 = por %p365_p10, %p364_p9 }
  0x20   :  { %54 = vadd.xlane.f32.xlu0 %v53_v10  ;;  %v271_v45 = vsub.s32 %v268_v44, %v72_v15 }
  0x21   :  { %p367_p12 = pnand %p366_p11, %p360_p8 }
  0xa9   :  { %v50_v16 = vpop.xlane.xlu0 %49 }
  0xaa   :  { %v57_v18 = vmul.f32 0.00390625, %v50_v16 }
  0xac   :  { %v74_v21 = vrot.slane %v57_v18, %v73_v17 }
  0xad   :  { %v55_v19 = vpop.xlane.xlu0 %54 }
  0xae   :  { %v58_v20 = vmul.f32 0.00390625, %v55_v19 }
  0xb0   :  { %v78_v22 = vrot.slane %v58_v20, %v73_v17 }
  0xb2   :  { %v80_v23 = vsel %vm79_vm2, %v78_v22, %v74_v21 }
  0xb3   :  { %317 = vmatmul.mubr.msk.f32.vlgmr.msra.gmra.mrb[0].mxu0 %vm81_vm3, %v80_v23 }
 0x186   :  { %v153_v26 = vpop.f32.mrb[0].mxu0 }
 0x187   :  { %v154_v27 = vadd.f32 %v303_v25, %v153_v26  ;;  %v318_v28 = vpop.f32.mrb[1].mxu0 }
 0x189   :  { %v157_v29 = vmax.f32 %v154_v27, 0.0 }
 0x18b   :  { %322 = vmatmul.mubr.msk.f32.vlgmr.msra.gmra.mrb[0].mxu1 %vm166_vm5, %v157_v29 }
 0x25e   :  { %v240_v31 = vpop.f32.mrb[0].mxu1 }
 0x25f   :  { %v241_v32 = vadd.f32 %v306_v30, %v240_v31  ;;  %v323_v33 = vpop.f32.mrb[1].mxu1 }
 0x261   :  { %v309_v34 = vmul.f32 -1.442695, %v241_v32 }
 0x263   :  { %333 = vpow2.f32 %v309_v34 }
 0x26d   :  { %v334_v35 = vpop.eup %333 }
 0x26e   :  { %v247_v36 = vadd.f32 1.0, %v334_v35 }
 0x270   :  { %335 = vrcp.f32 %v247_v36 }
 0x27a   :  { %v336_v38 = vpop.eup %335 }
 0x27b   :  { %v253_v39 = vrot.slane %v336_v38, %v252_v37  ;;  %v260_v41 = vrot.slane %v336_v38, %v259_v40 }
 0x27d   :  { %255 = vbcast.lane.b32.xlu1 %v253_v39, 256 }
 0x281   :  { %262 = vbcast.lane.b32.xlu1 %v260_v41, 256 }
 0x2ef   :  { %v256_v46 = vpop.permute.xlu1 %255 }
 0x2f0   :  { %v272_v47 = vrot.slane %v256_v46, %v271_v45 }
 0x2f2   :  { %v282_v48 = vmul.f32 %v272_v47, %v440_v1 }
 0x2f3   :  { %v263_v49 = vpop.permute.xlu1 %262 }
 0x2f4   :  { %284 = vst [vmem:[#allocation6] sm:$0xff] %v282_v48  ;;  %v279_v50 = vrot.slane %v263_v49, %v271_v45 }
 0x2f6   :  { %v283_v51 = vmul.f32 %v279_v50, %v442_v2 }
 0x2f8   :  { %285 = vst [vmem:[#allocation6 + $0x8] sm:$0xff] %v283_v51 }
 0x2f9   :  { %370 = shalt.err (!%p367_p12)
}
 0x2fa   :  { %s371_s15 = scalar_lea.hbm %s486_s5, 256 }
 0x2fb   :  { %p372_p13 = scmp.ne.s32.totalorder %s486_s5, %s371_s15  ;;  %p375_p0 = scmp.lt.u32.totalorder %s371_s15, %s486_s5 }
 0x2fd   :  { %p377_p1 = pnand %p375_p0, %p372_p13 }
 0x2ff   :  { %380 = shalt.err (!%p377_p1)
}
 0x300   :  { %297 = dma.vmem_to_hbm [thread:$0]  %s292_s4, 256, %s486_s5, [#allocation5], %s386_s29, %s386_s29, %s387_s30  }
 0x301   :  { %383 = dma.done.wait [#allocation5], 256  }
 0x302   :  { %384 = vsyncadd [#allocation5], 4294967040 }
 0x303   :  { %301 = vsyncpa [#allocation4], 1 }
 0x304   :  { %302 = vsyncpa [#allocation5], 1 }

</bundles_post_ra>
